<compile_context>
chip_gen: v7x
topology: tpu7x:2x2x1
jax: 0.10.0
libtpu: 0.0.40
codegen_flags: <defaults>
</compile_context>

<pallas_src>
import jax
import jax.numpy as jnp
from jax.experimental import pallas as pl
from jax.experimental.pallas import tpu as pltpu


def critic_kernel(x_ref, wc_ref, wl_ref, bc_ref, bl_ref, out_ref):
    # x_ref  : (F, A, Bt) VMEM   batch on the 128-lane axis (lane-dense)
    # wc_ref : (F,)       SMEM   conv weight row (Conv2d(1,1,[1,F]))
    # wl_ref : (A, 1)     VMEM   linear weight as a column vector
    # bc_ref : (1,)       SMEM   conv bias
    # bl_ref : (1,)       SMEM   linear bias
    # out_ref: (1, Bt)    VMEM   lane-dense output row
    F = x_ref.shape[0]

    # Conv2d(1,1,[1,F]) == per-(row, batch) dot over the F features. With F on
    # the leading axis this is an unrolled chain of scalar*vector mul-adds on
    # fully packed (A, Bt) vregs -- pure VALU work, scalar operands from SMEM.
    h = x_ref[0] * wc_ref[0]
    for f in range(1, F):
        h = h + x_ref[f] * wc_ref[f]
    h = jnp.maximum(h + bc_ref[0], 0.0)                       # bias + ReLU, (A, Bt)

    # Linear(action_dim, 1): weighted sublane reduce over A -> (1, Bt).
    out = jnp.sum(h * wl_ref[...], axis=0, keepdims=True)
    out_ref[...] = (out + bl_ref[0]).astype(out_ref.dtype)


def critic_forward(obs, conv_w, conv_b, lin_w, lin_b, *, block_b=2048):
    """obs: (B, 1, A, F) NCHW float32. Returns (B, 1) values."""
    B, C, A, F = obs.shape
    assert C == 1
    obs = obs.astype(jnp.float32)

    # Lane-major layout plumbing: (B,1,A,F) -> (F, A, B) so batch maps to lanes
    # and the output row stores unmasked / lane-dense.
    x = jnp.transpose(obs.reshape(B, A, F), (2, 1, 0))        # (F, A, B)

    # Batch tile: multiple of 128 lanes, capped so a single x tile stays
    # <= ~2 MiB (double-buffered by the pipeline -> comfortably inside scoped
    # VMEM on v5e/v6e/v7x even for larger F/A).
    bytes_per_lane = max(F * A * 4, 1)
    bt_vmem_cap = max(128, ((2 << 20) // bytes_per_lane) // 128 * 128)
    bt = max(128, min(block_b, bt_vmem_cap, pl.cdiv(B, 128) * 128))
    b_pad = pl.cdiv(B, bt) * bt
    if b_pad != B:
        x = jnp.pad(x, ((0, 0), (0, 0), (0, b_pad - B)))      # pad tail lanes

    wc = conv_w.reshape(F).astype(jnp.float32)                # (F,)   SMEM scalars
    bc = conv_b.reshape(1).astype(jnp.float32)                # (1,)   SMEM scalar
    wl = lin_w.reshape(A, 1).astype(jnp.float32)              # (A, 1) VMEM column
    bl = lin_b.reshape(1).astype(jnp.float32)                 # (1,)   SMEM scalar

    grid = (b_pad // bt,)
    cost = pl.CostEstimate(
        flops=2 * B * A * (F + 1),
        transcendentals=0,
        bytes_accessed=B * A * F * 4 + B * 4 + (F + A + 2) * 4,
    )

    out = pl.pallas_call(
        critic_kernel,
        out_shape=jax.ShapeDtypeStruct((1, b_pad), jnp.float32),
        grid=grid,
        in_specs=[
            # x: tiled over batch (lanes); auto double-buffered by the pipeline.
            pl.BlockSpec((F, A, bt), lambda i: (0, 0, i)),
            # Parameters stay resident: SMEM scalars / constant-index VMEM block.
            pl.BlockSpec(memory_space=pltpu.MemorySpace.SMEM),   # conv weight
            pl.BlockSpec((A, 1), lambda i: (0, 0)),              # linear weight
            pl.BlockSpec(memory_space=pltpu.MemorySpace.SMEM),   # conv bias
            pl.BlockSpec(memory_space=pltpu.MemorySpace.SMEM),   # linear bias
        ],
        out_specs=pl.BlockSpec((1, bt), lambda i: (0, i)),
        compiler_params=pltpu.CompilerParams(
            dimension_semantics=("parallel",),                   # megacore on v7x
        ),
        cost_estimate=cost,
    )(x, wc, wl, bc, bl)

    return out[:, :B].T                                          # (B, 1)


def critic_ref(obs, conv_w, conv_b, lin_w, lin_b):
    """Pure-JAX reference for correctness check."""
    B, _, A, F = obs.shape
    x = obs.reshape(B, A, F)
    h = jnp.einsum("baf,f->ba", x, conv_w.reshape(F)) + conv_b.reshape(())
    h = jnp.maximum(h, 0.0)
    return h @ lin_w.reshape(1, A).T + lin_b.reshape(1)


if __name__ == "__main__":
    # Small shapes consistent with the module's forward.
    batch, action_dim, feature_dim = 2, 8, 4

    key = jax.random.PRNGKey(0)
    k_obs, k_cw, k_cb, k_lw, k_lb = jax.random.split(key, 5)

    # Deterministic synthetic parameters (shapes match nn.Conv2d / nn.Linear).
    obs = jax.random.normal(k_obs, (batch, 1, action_dim, feature_dim), jnp.float32)
    conv_w = jax.random.normal(k_cw, (1, 1, 1, feature_dim), jnp.float32) * 0.5
    conv_b = jax.random.normal(k_cb, (1,), jnp.float32) * 0.1
    lin_w = jax.random.normal(k_lw, (1, action_dim), jnp.float32) * 0.5
    lin_b = jax.random.normal(k_lb, (1,), jnp.float32) * 0.1

    out = jax.block_until_ready(critic_forward(obs, conv_w, conv_b, lin_w, lin_b))
    expected = critic_ref(obs, conv_w, conv_b, lin_w, lin_b)
    assert out.shape == (batch, 1), out.shape
    assert jnp.allclose(out, expected, atol=1e-5, rtol=1e-5), (out, expected)

    # Larger batch: exercises a multi-tile parallel grid + padded batch tail.
    batch2 = 300
    obs2 = jax.random.normal(
        jax.random.PRNGKey(1), (batch2, 1, action_dim, feature_dim), jnp.float32)
    out2 = jax.block_until_ready(
        critic_forward(obs2, conv_w, conv_b, lin_w, lin_b, block_b=128))
    exp2 = critic_ref(obs2, conv_w, conv_b, lin_w, lin_b)
    assert out2.shape == (batch2, 1), out2.shape
    assert jnp.allclose(out2, exp2, atol=1e-5, rtol=1e-5)

    print("KERNEL_OK")
</pallas_src>

<mosaic_0001>
module attributes {stable_mosaic.version = 11 : i64} {
  func.func @critic_kernel(%arg0: i32, %arg1: memref<4x8x128xf32, #tpu.memory_space<vmem>>, %arg2: memref<4xf32, #tpu.memory_space<smem>>, %arg3: memref<8x1xf32, #tpu.memory_space<vmem>>, %arg4: memref<1xf32, #tpu.memory_space<smem>>, %arg5: memref<1xf32, #tpu.memory_space<smem>>, %arg6: memref<1x128xf32, #tpu.memory_space<vmem>>) attributes {dimension_semantics = [#tpu.dimension_semantics<parallel>], iteration_bounds = array<i64: 1>, scalar_prefetch = 0 : i64, scratch_operands = 0 : i64, tpu.core_type = #tpu.core_type<tc>, window_params = [{transform_indices = @transform_0, window_bounds = array<i64: 4, 8, 128>}, {transform_indices = @transform_1, window_bounds = array<i64: 4>}, {pipeline_mode = #tpu.pipeline_mode<synchronous>, transform_indices = @transform_2, window_bounds = array<i64: 8, 1>}, {transform_indices = @transform_3, window_bounds = array<i64: 1>}, {transform_indices = @transform_4, window_bounds = array<i64: 1>}, {transform_indices = @transform_5, window_bounds = array<i64: 1, 128>}]} {
    %c0 = arith.constant 0 : index
    %c0_0 = arith.constant 0 : index
    %c0_1 = arith.constant 0 : index
    %0 = vector.load %arg1[%c0, %c0_0, %c0_1] : memref<4x8x128xf32, #tpu.memory_space<vmem>>, vector<1x8x128xf32>
    %1 = vector.shape_cast %0 : vector<1x8x128xf32> to vector<8x128xf32>
    %c0_2 = arith.constant 0 : index
    %2 = memref.load %arg2[%c0_2] : memref<4xf32, #tpu.memory_space<smem>>
    %3 = vector.broadcast %2 : f32 to vector<8x128xf32>
    %4 = arith.mulf %1, %3 : vector<8x128xf32>
    %c1 = arith.constant 1 : index
    %c0_3 = arith.constant 0 : index
    %c0_4 = arith.constant 0 : index
    %5 = vector.load %arg1[%c1, %c0_3, %c0_4] : memref<4x8x128xf32, #tpu.memory_space<vmem>>, vector<1x8x128xf32>
    %6 = vector.shape_cast %5 : vector<1x8x128xf32> to vector<8x128xf32>
    %c1_5 = arith.constant 1 : index
    %7 = memref.load %arg2[%c1_5] : memref<4xf32, #tpu.memory_space<smem>>
    %8 = vector.broadcast %7 : f32 to vector<8x128xf32>
    %9 = arith.mulf %6, %8 : vector<8x128xf32>
    %10 = arith.addf %4, %9 : vector<8x128xf32>
    %c2 = arith.constant 2 : index
    %c0_6 = arith.constant 0 : index
    %c0_7 = arith.constant 0 : index
    %11 = vector.load %arg1[%c2, %c0_6, %c0_7] : memref<4x8x128xf32, #tpu.memory_space<vmem>>, vector<1x8x128xf32>
    %12 = vector.shape_cast %11 : vector<1x8x128xf32> to vector<8x128xf32>
    %c2_8 = arith.constant 2 : index
    %13 = memref.load %arg2[%c2_8] : memref<4xf32, #tpu.memory_space<smem>>
    %14 = vector.broadcast %13 : f32 to vector<8x128xf32>
    %15 = arith.mulf %12, %14 : vector<8x128xf32>
    %16 = arith.addf %10, %15 : vector<8x128xf32>
    %c3 = arith.constant 3 : index
    %c0_9 = arith.constant 0 : index
    %c0_10 = arith.constant 0 : index
    %17 = vector.load %arg1[%c3, %c0_9, %c0_10] : memref<4x8x128xf32, #tpu.memory_space<vmem>>, vector<1x8x128xf32>
    %18 = vector.shape_cast %17 : vector<1x8x128xf32> to vector<8x128xf32>
    %c3_11 = arith.constant 3 : index
    %19 = memref.load %arg2[%c3_11] : memref<4xf32, #tpu.memory_space<smem>>
    %20 = vector.broadcast %19 : f32 to vector<8x128xf32>
    %21 = arith.mulf %18, %20 : vector<8x128xf32>
    %22 = arith.addf %16, %21 : vector<8x128xf32>
    %c0_12 = arith.constant 0 : index
    %23 = memref.load %arg4[%c0_12] : memref<1xf32, #tpu.memory_space<smem>>
    %24 = vector.broadcast %23 : f32 to vector<8x128xf32>
    %25 = arith.addf %22, %24 : vector<8x128xf32>
    %cst = arith.constant 0.000000e+00 : f32
    %26 = vector.broadcast %cst : f32 to vector<8x128xf32>
    %27 = arith.maximumf %25, %26 : vector<8x128xf32>
    %c0_13 = arith.constant 0 : index
    %c0_14 = arith.constant 0 : index
    %28 = vector.load %arg3[%c0_13, %c0_14] : memref<8x1xf32, #tpu.memory_space<vmem>>, vector<8x1xf32>
    %29 = vector.broadcast %28 : vector<8x1xf32> to vector<8x128xf32>
    %30 = arith.mulf %27, %29 : vector<8x128xf32>
    %cst_15 = arith.constant dense<0.000000e+00> : vector<128xf32>
    %31 = vector.multi_reduction <add>, %30, %cst_15 [0] : vector<8x128xf32> to vector<128xf32>
    %32 = vector.shape_cast %31 : vector<128xf32> to vector<1x128xf32>
    %c0_16 = arith.constant 0 : index
    %33 = memref.load %arg5[%c0_16] : memref<1xf32, #tpu.memory_space<smem>>
    %34 = vector.broadcast %33 : f32 to vector<1x128xf32>
    %35 = arith.addf %32, %34 : vector<1x128xf32>
    %c0_17 = arith.constant 0 : index
    %c0_18 = arith.constant 0 : index
    %36 = vector.load %arg6[%c0_17, %c0_18] : memref<1x128xf32, #tpu.memory_space<vmem>>, vector<1x128xf32>
    tpu.vector_store %arg6[%c0_17, %c0_18], %35 {strides = array<i32>} : memref<1x128xf32, #tpu.memory_space<vmem>>, vector<1x128xf32>,
    return
  }
  func.func @transform_0(%arg0: i32) -> (i32, i32, i32) {
    %c0_i32 = arith.constant 0 : i32
    %c0_i32_0 = arith.constant 0 : i32
    %c0_i32_1 = arith.constant 0 : i32
    return %c0_i32, %c0_i32_0, %arg0 : i32, i32, i32
  }
  func.func @transform_1(%arg0: i32) -> i32 {
    %c0_i32 = arith.constant 0 : i32
    %c0_i32_0 = arith.constant 0 : i32
    return %c0_i32 : i32
  }
  func.func @transform_2(%arg0: i32) -> (i32, i32) {
    %c0_i32 = arith.constant 0 : i32
    %c0_i32_0 = arith.constant 0 : i32
    %c0_i32_1 = arith.constant 0 : i32
    return %c0_i32, %c0_i32_0 : i32, i32
  }
  func.func @transform_3(%arg0: i32) -> i32 {
    %c0_i32 = arith.constant 0 : i32
    %c0_i32_0 = arith.constant 0 : i32
    return %c0_i32 : i32
  }
  func.func @transform_4(%arg0: i32) -> i32 {
    %c0_i32 = arith.constant 0 : i32
    %c0_i32_0 = arith.constant 0 : i32
    return %c0_i32 : i32
  }
  func.func @transform_5(%arg0: i32) -> (i32, i32) {
    %c0_i32 = arith.constant 0 : i32
    %c0_i32_0 = arith.constant 0 : i32
    return %c0_i32, %arg0 : i32, i32
  }
}

</mosaic_0001>

<bundles_post_ra>
// kernel: tpu_custom_call.1
= control target key start
LH: loop header
LB: loop body
LE: loop exit
PB: predicated region body
PF: predicated region fallthrough
CT: control target
= control target key end

     0   :  { %12 = vsyncpa [#allocation5], 0  ;;  %s253_s0 = inlined_call_operand.hbm [shape: f32[4,8,128], index: 0, kind: input, shape index: {}]   ;;  %s254_s1 = inlined_call_operand.vmem [shape: f32[4], index: 1, kind: input, shape index: {}]   ;;  %s255_s2 = inlined_call_operand.vmem [shape: f32[8,1], index: 2, kind: input, shape index: {}]   ;;  %s256_s3 = inlined_call_operand.<no memory space> [shape: f32[1], index: 3, kind: input, shape index: {}]   ;;  %s257_s4 = inlined_call_operand.<no memory space> [shape: f32[1], index: 4, kind: input, shape index: {}]   ;;  %s258_s5 = inlined_call_operand.hbm [shape: f32[1,128], index: 5, kind: output, shape index: {}]  }
   0x1   :  { %13 = vsyncpa [#allocation7], 0 }
   0x2   :  { %14 = vsyncpa [#allocation6], 0  ;;  %s181_s18 = smov [#allocation4]   ;;  %s33_s22 = sshll.u32 %s254_s1, 4  ;;  %s34_s22 = int_to_ptr.vmem [resolvable:$true] %s33_s22 }
   0x3   :  { %s20_s19 = sshll.u32 %s181_s18, 4  ;;  %s119_s25 = scalar_lea.hbm %s253_s0, 512  ;;  %s21_s19 = int_to_ptr.vmem [resolvable:$true] %s20_s19 }
   0x4   :  { %p120_p0 = scmp.ne.s32.totalorder %s253_s0, %s119_s25  ;;  %p123_p1 = scmp.lt.u32.totalorder %s119_s25, %s253_s0 }
   0x6   :  { %p125_p2 = pnand %p123_p1, %p120_p0 }
   0x8   :  { %128 = shalt.err (!%p125_p2)
}
   0x9   :  { %s129_s30 = scalar_lea.vmem %s21_s19, 512  ;;  %p134_p4 = scmp.lt.s32.totalorder %s21_s19, %s21_s19 }
   0xa   :  { %p130_p3 = scmp.ne.s32.totalorder %s21_s19, %s129_s30  ;;  %p135_p5 = scmp.lt.s32.totalorder %s129_s30, %s129_s30 }
   0xc   :  { %p136_p6 = por %p135_p5, %p134_p4 }
   0xe   :  { %p137_p7 = pnand %p136_p6, %p130_p3 }
  0x10   :  { %140 = shalt.err (!%p137_p7)
}
  0x11   :  { %s182_s1 = smov 128   ;;  %s183_s6 = smov 8  }
  0x12   :  { %26 = dma.hbm_to_vmem [thread:$0]  %s253_s0, 512, %s21_s19, [#allocation5], %s182_s1, %s182_s1, %s183_s6  }
  0x13   :  { %s141_s9 = scalar_lea.vmem %s34_s22, 16  ;;  %p146_p9 = scmp.lt.s32.totalorder %s34_s22, %s34_s22 }
  0x14   :  { %p142_p8 = scmp.ne.s32.totalorder %s34_s22, %s141_s9  ;;  %p147_p10 = scmp.lt.s32.totalorder %s141_s9, %s141_s9 }
  0x16   :  { %p148_p11 = por %p147_p10, %p146_p9 }
  0x18   :  { %p149_p12 = pnand %p148_p11, %p142_p8 }
  0x1a   :  { %152 = shalt.err (!%p149_p12)
}
  0x1b   :  { %s184_s10 = smov [#allocation8]  }
  0x1c   :  { %36 = dma.vmem_to_smem %s34_s22, 16, %s184_s10, [#allocation7]  }
  0x1d   :  { %175 = dma.done.wait [#allocation5], 512  }
  0x1e   :  { %176 = vsyncadd [#allocation5], 4294966784 }
  0x1f   :  { %177 = dma.done.wait [#allocation7], 16  }
  0x20   :  { %178 = vsyncadd [#allocation7], 4294967280 }
  0x21   :  { %49 = sfence }
  0x22   :  { %v76_v0 = vld [vmem:[%s255_s2] sm:$0xff]  ;;  %v185_v1 = vmov 0   ;;  %s51_s0 = sld [smem:[#allocation8]]  ;;  %s109_s13 = sld [smem:[#allocation8 + $0x1]]  ;;  %v55_v4 = vld [vmem:[#allocation4 + $0x8] sm:$0xff]  ;;  %v61_v8 = vld [vmem:[#allocation4 + $0x10] sm:$0xff]  ;;  %v73_v17 = vstv %s256_s3  ;;  %v90_v27 = vstv %s257_s4 }
  0x23   :  { %118 = vset.pattern.permute.xlu0 %v185_v1  ;;  %s110_s14 = sld [smem:[#allocation8 + $0x2]]  ;;  %v50_v2 = vld [vmem:[#allocation4] sm:$0xff]  ;;  %s111_s15 = sld [smem:[#allocation8 + $0x3]]  ;;  %v67_v12 = vld [vmem:[#allocation4 + $0x18] sm:$0xff] }
  0x24   :  { %79 = vperm.xlu0 %118, %v76_v0   ;;  %s186_s19 = smov [#allocation9]  }
  0x25   :  { %s99_s20 = sshll.u32 %s186_s19, 4  ;;  %s100_s20 = int_to_ptr.vmem [resolvable:$true] %s99_s20 }
  0x26   :  { %s153_s3 = scalar_lea.vmem %s100_s20, 16  ;;  %s157_s21 = scalar_lea.vmem %s100_s20, 32 }
  0x27   :  { %p154_p13 = scmp.ne.s32.totalorder %s100_s20, %s153_s3  ;;  %p158_p0 = scmp.lt.s32.totalorder %s100_s20, %s100_s20 }
  0x28   :  { %v52_v3 = vstv %s51_s0  ;;  %v57_v5 = vstv %s109_s13  ;;  %p159_p1 = scmp.lt.s32.totalorder %s157_s21, %s153_s3 }
  0x29   :  { %v53_v6 = vmul.f32 %v52_v3, %v50_v2  ;;  %v58_v7 = vmul.f32 %v57_v5, %v55_v4  ;;  %v63_v9 = vstv %s110_s14  ;;  %v69_v13 = vstv %s111_s15 }
  0x2a   :  { %v64_v11 = vmul.f32 %v63_v9, %v61_v8  ;;  %v70_v15 = vmul.f32 %v69_v13, %v67_v12  ;;  %p160_p2 = por %p159_p1, %p158_p0 }
  0x2b   :  { %v59_v10 = vadd.f32 %v58_v7, %v53_v6 }
  0x2c   :  { %p161_p3 = pnand %p160_p2, %p154_p13 }
  0x2d   :  { %v65_v14 = vadd.f32 %v64_v11, %v59_v10 }
  0x2f   :  { %v71_v16 = vadd.f32 %v70_v15, %v65_v14 }
  0x31   :  { %v74_v18 = vadd.f32 %v73_v17, %v71_v16 }
  0x33   :  { %v75_v19 = vmax.f32 %v74_v18, 0.0 }
  0xa3   :  { %v80_v20 = vpop.permute.xlu0 %79 }
  0xa4   :  { %v82_v21 = vmul.f32 %v80_v20, %v75_v19 }
  0xa6   :  { %v83_v22 = vrot.slane %v82_v21, 4 }
  0xa8   :  { %v84_v23 = vadd.f32 %v83_v22, %v82_v21 }
  0xaa   :  { %v85_v24 = vrot.slane %v84_v23, 2 }
  0xac   :  { %v86_v25 = vadd.f32 %v85_v24, %v84_v23 }
  0xae   :  { %v87_v26 = vrot.slane %v86_v25, 1 }
  0xb0   :  { %v88_v28 = vadd.f32 %v87_v26, %v86_v25 }
  0xb2   :  { %v91_v29 = vadd.f32 %v90_v27, %v88_v28 }
  0xb4   :  { %92 = vst [vmem:[#allocation9] sm:$0x1] %v91_v29 }
  0xb5   :  { %164 = shalt.err (!%p161_p3)
}
  0xb6   :  { %s165_s24 = scalar_lea.hbm %s258_s5, 16 }
  0xb7   :  { %p166_p4 = scmp.ne.s32.totalorder %s258_s5, %s165_s24  ;;  %p169_p5 = scmp.lt.u32.totalorder %s165_s24, %s258_s5 }
  0xb9   :  { %p171_p6 = pnand %p169_p5, %p166_p4 }
  0xbb   :  { %174 = shalt.err (!%p171_p6)
}
  0xbc   :  { %102 = dma.vmem_to_hbm [thread:$0]  %s100_s20, 16, %s258_s5, [#allocation6]  }
  0xbd   :  { %179 = dma.done.wait [#allocation6], 16  }
  0xbe   :  { %180 = vsyncadd [#allocation6], 4294967280 }
  0xbf   :  { %106 = vsyncpa [#allocation5], 1 }
  0xc0   :  { %107 = vsyncpa [#allocation6], 1 }
  0xc1   :  { %108 = vsyncpa [#allocation7], 1 }

</bundles_post_ra>
